<compile_context>
chip_gen: v6e
topology: v6e:2x2x1
jax: 0.10.0
libtpu: 0.0.40
codegen_flags: <defaults>
</compile_context>

<pallas_src>
import numpy as np
import jax
import jax.numpy as jnp
from jax.experimental import pallas as pl
from jax.experimental.pallas import tpu as pltpu

EPS = 1e-5  # nn.BatchNorm2d default eps

# MXU operand dtype (accumulation is always f32, elementwise math is always f32).
#   jnp.bfloat16 -> native MXU, half the weight DMA   (tolerance ~5e-2 vs f32 reference)
#   jnp.float32  -> multi-pass MXU emulation          (tolerance ~5e-3)
MM_DTYPE = jnp.bfloat16


# --------------------- one-time parameter / structure prep -------------------

def prepare_block_params(params, n, h, w):
    """One-time re-layout of Block parameters into 3 packed kernel operands."""
    f32 = np.float32
    conv1_w = np.asarray(params["conv1_w"], f32)   # (cout, cin, 3, 3)
    conv2_w = np.asarray(params["conv2_w"], f32)   # (cout, cout, 3, 3)
    trans_w = np.asarray(params["trans_w"], f32)   # (cout, cout, 4, 4)
    cout, cin = conv1_w.shape[0], conv1_w.shape[1]
    temb = int(np.asarray(params["time_w"]).shape[1])
    ho = (h + 2 - 4) // 2 + 1
    wo = (w + 2 - 4) // 2 + 1
    nh, nho = n * h, n * ho
    wc1, wc2, wo_c = w * cin, w * cout, wo * cout

    # layout restrictions of this fused kernel (all hold for the module's shapes)
    assert wc2 % 128 == 0, "W*out_ch must be a multiple of 128 (lane-dense layout)"
    assert wc1 <= wc2 and wo_c <= wc2 and temb <= wc2
    assert (w & (w - 1)) == 0, "W must be a power of two (lane roll-tree BatchNorm)"
    assert nh % 8 == 0 and nho % 8 == 0

    # width-tap selectors: sel[kx, x_in, x_out] = 1 iff x_in == stride*x_out + kx - 1
    def width_sel(ksize, stride, w_out):
        sel = np.zeros((ksize, w, w_out), f32)
        for kx in range(ksize):
            for xo in range(w_out):
                xi = stride * xo + kx - 1
                if 0 <= xi < w:
                    sel[kx, xi, xo] = 1.0
        return sel

    def toeplitz_cat(w_oihw, sel, w_out):
        # block-Toeplitz conv weights (width taps + width zero padding + stride folded
        # in), height taps concatenated along K, each tap padded to a (wc2, wc2) tile so
        # every in-kernel concat / matmul operand is 128-lane aligned.
        co, ci, kh, kw = w_oihw.shape
        blocks = []
        for ky in range(kh):
            t_full = np.zeros((w, ci, w_out, co), f32)
            for kx in range(kw):
                wk = w_oihw[:, :, ky, kx]                         # (co, ci)
                t_full += sel[kx][:, None, :, None] * wk.T[None, :, None, :]
            blk = np.zeros((wc2, wc2), f32)
            blk[: w * ci, : w_out * co] = t_full.reshape(w * ci, w_out * co)
            blocks.append(blk)
        return np.concatenate(blocks, axis=0)                     # (kh*wc2, wc2)

    t1 = toeplitz_cat(conv1_w, width_sel(3, 1, w), w)             # (3*wc2, wc2)
    t2 = toeplitz_cat(conv2_w, width_sel(3, 1, w), w)             # (3*wc2, wc2)
    t3 = toeplitz_cat(trans_w, width_sel(4, 2, wo), wo)           # (4*wc2, wc2)
    toep = jnp.asarray(np.concatenate([t1, t2, t3], axis=0), MM_DTYPE)   # (10*wc2, wc2)

    # stacked stride-2 height-tap row selectors for the transform conv (0/1 -> bf16 exact)
    g3 = np.zeros((4, nho, nh), f32)
    for ky in range(4):
        for b in range(n):
            for oy in range(ho):
                yi = 2 * oy + ky - 1
                if 0 <= yi < h:
                    g3[ky, b * ho + oy, b * h + yi] = 1.0
    g3s = jnp.asarray(g3.reshape(4 * nho, nh), MM_DTYPE)

    # packed f32 aux slab: rows 0-6 lane-tiled bias/gamma/beta, row 7 time_b,
    # rows 8..8+wc2 the (zero-padded) time-MLP weight.
    def lane_tile(v, reps):
        row = np.zeros((wc2,), f32)
        vv = np.asarray(v, f32)
        row[: reps * vv.shape[0]] = np.tile(vv, reps)
        return row

    aux = np.zeros((8 + wc2, wc2), f32)
    aux[0] = lane_tile(params["conv1_b"], w)
    aux[1] = lane_tile(params["bn1_g"], w)
    aux[2] = lane_tile(params["bn1_b"], w)
    aux[3] = lane_tile(params["conv2_b"], w)
    aux[4] = lane_tile(params["bn2_g"], w)
    aux[5] = lane_tile(params["bn2_b"], w)
    aux[6] = lane_tile(params["trans_b"], wo)
    aux[7, :cout] = np.asarray(params["time_b"], f32)
    aux[8: 8 + temb, :cout] = np.asarray(params["time_w"], f32).T
    return {"toep": toep, "g3s": g3s, "aux": jnp.asarray(aux)}


# ------------------------------- fused kernel --------------------------------

def _block_kernel_factory(n, h, w, ho, wo, cout):
    nh, nho = n * h, n * ho
    wc2 = w * cout
    inv_cnt = 1.0 / float(n * h * w)   # BatchNorm element count per channel
    f32 = jnp.float32

    def kernel(data_ref, aux_ref, g3s_ref, toep_ref, o_ref):
        x = data_ref[0:nh, :]                     # (nh, wc2) f32, lanes >= W*Cin are zero
        t_pad = data_ref[nh:nh + n, :]            # (n, wc2)  f32, lanes >= temb are zero
        lv = aux_ref[0:8, :]                      # packed bias/gamma/beta/time_b rows
        tw = aux_ref[8:8 + wc2, :]                # (wc2, wc2) padded time-MLP weight

        b1, gm1, bt1 = lv[0:1, :], lv[1:2, :], lv[2:3, :]
        b2, gm2, bt2 = lv[3:4, :], lv[4:5, :], lv[5:6, :]
        b3, tb = lv[6:7, :], lv[7:8, :]

        # row index within each image (hoisted; used for the conv padding masks)
        y_img = jax.lax.broadcasted_iota(jnp.int32, (nh, wc2), 0) % h

        def fold_lanes(v):
            # per-channel reduction over the W lane groups, result replicated to every
            # lane (XLU lane rotations + VPU adds; replaces all BN fold/unfold matmuls).
            span = wc2 // 2
            while span >= cout:
                v = v + pltpu.roll(v, shift=span, axis=1)
                span //= 2
            return v

        def conv3x3(act, toep_block):
            # height taps via sublane roll + iota mask (zero padding AND batch boundary),
            # lane-concatenated so each 3x3 conv is a single MXU matmul with K = 3*wc2.
            pieces = []
            for ky in range(3):
                if ky == 1:
                    pieces.append(act)
                else:
                    rolled = pltpu.roll(act, shift=(1 - ky) % nh, axis=0)
                    valid = (y_img >= 1) if ky == 0 else (y_img < h - 1)
                    pieces.append(jnp.where(valid, rolled, 0.0))
            stack = jnp.concatenate(pieces, axis=1).astype(MM_DTYPE)
            return jnp.dot(stack, toep_block, preferred_element_type=f32)

        def batchnorm(hv, gamma, beta):
            # single-pass batch statistics (training-mode nn.BatchNorm2d, eps=1e-5).
            # TODO(synk): use two-pass / Welford stats for the future row-tiled path
            #             (E[x^2]-E[x]^2 is cancellation-prone for large activation means).
            mean = fold_lanes(jnp.sum(hv, axis=0, keepdims=True)) * inv_cnt
            ex2 = fold_lanes(jnp.sum(hv * hv, axis=0, keepdims=True)) * inv_cnt
            inv = jax.lax.rsqrt(ex2 - mean * mean + EPS)
            return (hv - mean) * inv * gamma + beta

        # time_emb = relu(Linear(t)), unfolded per channel (roll-tree) and replicated
        # over each image's rows -- all in VMEM, nothing broadcast through HBM.
        te = jnp.maximum(jnp.dot(t_pad, tw, preferred_element_type=f32) + tb, 0.0)
        te = fold_lanes(te)                                        # (n, wc2)
        te_rows = jnp.concatenate(
            [jnp.broadcast_to(te[b:b + 1, :], (h, wc2)) for b in range(n)], axis=0)

        # stage 1: h = bn1(relu(conv1(x))) + time_emb
        h1 = jnp.maximum(conv3x3(x, toep_ref[0:3 * wc2, :]) + b1, 0.0)
        h1 = batchnorm(h1, gm1, bt1) + te_rows

        # stage 2: h = bn2(relu(conv2(h)))
        h2 = jnp.maximum(conv3x3(h1, toep_ref[3 * wc2:6 * wc2, :]) + b2, 0.0)
        h2 = batchnorm(h2, gm2, bt2)

        # transform: Conv2d(C, C, 4, stride=2, padding=1)
        # stride-2 height taps via one stacked 0/1 row-selection matmul, then ONE
        # Toeplitz matmul with K = 4*wc2.  Output padded to 128 lanes -> unmasked stores.
        sel = jnp.dot(g3s_ref[...], h2.astype(MM_DTYPE), preferred_element_type=f32)
        stack = jnp.concatenate(
            [sel[k * nho:(k + 1) * nho, :] for k in range(4)], axis=1).astype(MM_DTYPE)
        o_ref[...] = jnp.dot(stack, toep_ref[6 * wc2:10 * wc2, :],
                             preferred_element_type=f32) + b3

    return kernel


# ------------------------------ public wrappers -------------------------------

def block_forward_prepared(prep, x_nchw, t):
    """Forward pass of Block(in_ch, out_ch, time_emb_dim, up=False) with prepared params."""
    n, cin, h, w = x_nchw.shape
    temb = t.shape[1]
    wc2 = prep["toep"].shape[1]
    cout = wc2 // w
    ho = (h + 2 - 4) // 2 + 1
    wo = (w + 2 - 4) // 2 + 1
    nh, nho = n * h, n * ho
    wc1, wo_c = w * cin, wo * cout
    assert prep["g3s"].shape == (4 * nho, nh) and prep["aux"].shape == (8 + wc2, wc2)

    # NCHW -> [rows = N*H, lanes = W*C] channel-minor slab, zero-padded to the 128-dense
    # lane width; the time input is appended as extra rows so the kernel gets ONE data
    # operand (fewer DMA descriptors).
    x2d = jnp.transpose(x_nchw, (0, 2, 3, 1)).reshape(nh, wc1).astype(jnp.float32)
    x2d = jnp.pad(x2d, ((0, 0), (0, wc2 - wc1)))
    t_pad = jnp.pad(t.astype(jnp.float32), ((0, 0), (0, wc2 - temb)))
    data = jnp.concatenate([x2d, t_pad], axis=0)                 # (nh + n, wc2)

    args = (data, prep["aux"], prep["g3s"], prep["toep"])

    # right-sized VMEM budget (review: don't reserve 32 MiB for a ~1 MiB kernel on v7x)
    in_bytes = sum(int(np.prod(a.shape)) * a.dtype.itemsize for a in args)
    temp_bytes = 24 * nh * wc2 * 4          # generous bound on in-kernel f32 temporaries
    work_bytes = in_bytes + nho * wc2 * 4 + temp_bytes
    if work_bytes > 32 * 1024 * 1024:
        # TODO(synk): row-tiled grid + two-pass BatchNorm (cross-tile sum/sumsq scratch,
        #             pl.when finalize) with a "parallel" row axis so v7x's two
        #             TensorCores split the work once activations outgrow VMEM.
        raise NotImplementedError("activation slab too large for the fused single-call kernel")
    vmem_limit = min(64 * 1024 * 1024,
                     max(4 * 1024 * 1024, -(-2 * work_bytes // (1 << 20)) * (1 << 20)))

    vmem = pl.BlockSpec(memory_space=pltpu.MemorySpace.VMEM)
    out2d = pl.pallas_call(
        _block_kernel_factory(n, h, w, ho, wo, cout),
        out_shape=jax.ShapeDtypeStruct((nho, wc2), jnp.float32),
        in_specs=[vmem] * len(args),
        out_specs=vmem,
        compiler_params=pltpu.CompilerParams(vmem_limit_bytes=vmem_limit),
    )(*args)

    out = out2d[:, :wo_c].reshape(n, ho, wo, cout)
    return jnp.transpose(out, (0, 3, 1, 2))                      # -> NCHW


def block_forward(params, x_nchw, t):
    """Convenience wrapper; prefer hoisting prepare_block_params out of the hot path."""
    n, _, h, w = x_nchw.shape
    return block_forward_prepared(prepare_block_params(params, n, h, w), x_nchw, t)


# --------------------------- pure-JAX reference -------------------------------

def block_forward_ref(params, x_nchw, t):
    dn = ("NHWC", "HWIO", "NHWC")

    def conv(x, w_oihw, b, stride, pad):
        w = jnp.transpose(w_oihw, (2, 3, 1, 0))
        y = jax.lax.conv_general_dilated(
            x, w, (stride, stride), [(pad, pad), (pad, pad)], dimension_numbers=dn)
        return y + b[None, None, None, :]

    def bn(hh, g, b):
        m = jnp.mean(hh, axis=(0, 1, 2), keepdims=True)
        v = jnp.mean((hh - m) ** 2, axis=(0, 1, 2), keepdims=True)
        return (hh - m) * jax.lax.rsqrt(v + EPS) * g + b

    x = jnp.transpose(x_nchw, (0, 2, 3, 1))
    h = bn(jnp.maximum(conv(x, params["conv1_w"], params["conv1_b"], 1, 1), 0.0),
           params["bn1_g"], params["bn1_b"])
    te = jnp.maximum(t @ params["time_w"].T + params["time_b"], 0.0)
    h = h + te[:, None, None, :]
    h = bn(jnp.maximum(conv(h, params["conv2_w"], params["conv2_b"], 1, 1), 0.0),
           params["bn2_g"], params["bn2_b"])
    out = conv(h, params["trans_w"], params["trans_b"], 2, 1)
    return jnp.transpose(out, (0, 3, 1, 2))


# ----------------------------------- main --------------------------------------

if __name__ == "__main__":
    in_ch, out_ch, temb_dim = 4, 8, 32
    N, H, W = 2, 16, 16

    key = jax.random.PRNGKey(0)
    ks = jax.random.split(key, 10)
    params = {
        "time_w": 0.1 * jax.random.normal(ks[0], (out_ch, temb_dim), jnp.float32),
        "time_b": 0.1 * jax.random.normal(ks[1], (out_ch,), jnp.float32),
        "conv1_w": 0.1 * jax.random.normal(ks[2], (out_ch, in_ch, 3, 3), jnp.float32),
        "conv1_b": 0.1 * jax.random.normal(ks[3], (out_ch,), jnp.float32),
        "conv2_w": 0.1 * jax.random.normal(ks[4], (out_ch, out_ch, 3, 3), jnp.float32),
        "conv2_b": 0.1 * jax.random.normal(ks[5], (out_ch,), jnp.float32),
        "trans_w": 0.1 * jax.random.normal(ks[6], (out_ch, out_ch, 4, 4), jnp.float32),
        "trans_b": 0.1 * jax.random.normal(ks[7], (out_ch,), jnp.float32),
        "bn1_g": jnp.ones((out_ch,), jnp.float32),
        "bn1_b": jnp.zeros((out_ch,), jnp.float32),
        "bn2_g": jnp.ones((out_ch,), jnp.float32),
        "bn2_b": jnp.zeros((out_ch,), jnp.float32),
    }

    x = jax.random.normal(ks[8], (N, in_ch, H, W), jnp.float32)
    t = jax.random.normal(ks[9], (N, temb_dim), jnp.float32)

    prep = prepare_block_params(params, N, H, W)   # one-time re-layout (hoisted)
    fwd = jax.jit(block_forward_prepared)
    out = fwd(prep, x, t)
    jax.block_until_ready(out)

    assert out.shape == (N, out_ch, H // 2, W // 2)
    ref = block_forward_ref(params, x, t)
    tol = 5e-3 if MM_DTYPE == jnp.float32 else 5e-2   # bf16 MXU operands -> ~5e-2
    np.testing.assert_allclose(np.asarray(out), np.asarray(ref), atol=tol, rtol=tol)

    print("KERNEL_OK")
</pallas_src>

<mosaic_0001>
module attributes {stable_mosaic.version = 11 : i64} {
  func.func @kernel(%arg0: memref<34x128xf32, #tpu.memory_space<vmem>>, %arg1: memref<136x128xf32, #tpu.memory_space<vmem>>, %arg2: memref<64x32xbf16, #tpu.memory_space<vmem>>, %arg3: memref<1280x128xbf16, #tpu.memory_space<vmem>>, %arg4: memref<16x128xf32, #tpu.memory_space<vmem>>) attributes {dimension_semantics = [], scalar_prefetch = 0 : i64, scratch_operands = 0 : i64, tpu.core_type = #tpu.core_type<tc>} {
    %c0 = arith.constant 0 : index
    %c0_0 = arith.constant 0 : index
    %0 = vector.load %arg0[%c0, %c0_0] : memref<34x128xf32, #tpu.memory_space<vmem>>, vector<32x128xf32>
    %c32 = arith.constant 32 : index
    %c0_1 = arith.constant 0 : index
    %1 = vector.load %arg0[%c32, %c0_1] : memref<34x128xf32, #tpu.memory_space<vmem>>, vector<2x128xf32>
    %c0_2 = arith.constant 0 : index
    %c0_3 = arith.constant 0 : index
    %2 = vector.load %arg1[%c0_2, %c0_3] : memref<136x128xf32, #tpu.memory_space<vmem>>, vector<8x128xf32>
    %c8 = arith.constant 8 : index
    %c0_4 = arith.constant 0 : index
    %3 = vector.load %arg1[%c8, %c0_4] : memref<136x128xf32, #tpu.memory_space<vmem>>, vector<128x128xf32>
    %4 = vector.extract_strided_slice %2 {offsets = [0, 0], sizes = [1, 128], strides = [1, 1]} : vector<8x128xf32> to vector<1x128xf32>
    %5 = vector.extract_strided_slice %2 {offsets = [1, 0], sizes = [1, 128], strides = [1, 1]} : vector<8x128xf32> to vector<1x128xf32>
    %6 = vector.extract_strided_slice %2 {offsets = [2, 0], sizes = [1, 128], strides = [1, 1]} : vector<8x128xf32> to vector<1x128xf32>
    %7 = vector.extract_strided_slice %2 {offsets = [3, 0], sizes = [1, 128], strides = [1, 1]} : vector<8x128xf32> to vector<1x128xf32>
    %8 = vector.extract_strided_slice %2 {offsets = [4, 0], sizes = [1, 128], strides = [1, 1]} : vector<8x128xf32> to vector<1x128xf32>
    %9 = vector.extract_strided_slice %2 {offsets = [5, 0], sizes = [1, 128], strides = [1, 1]} : vector<8x128xf32> to vector<1x128xf32>
    %10 = vector.extract_strided_slice %2 {offsets = [6, 0], sizes = [1, 128], strides = [1, 1]} : vector<8x128xf32> to vector<1x128xf32>
    %11 = vector.extract_strided_slice %2 {offsets = [7, 0], sizes = [1, 128], strides = [1, 1]} : vector<8x128xf32> to vector<1x128xf32>
    %12 = tpu.iota {dimensions = array<i32: 0>} : vector<32x128xi32>
    %c16_i32 = arith.constant 16 : i32
    %c0_i32 = arith.constant 0 : i32
    %13 = arith.cmpi eq, %c16_i32, %c0_i32 : i32
    %c1_i32 = arith.constant 1 : i32
    %14 = arith.select %13, %c1_i32, %c16_i32 : i32
    %15 = vector.broadcast %14 : i32 to vector<32x128xi32>
    %16 = arith.remsi %12, %15 : vector<32x128xi32>
    %c0_i32_5 = arith.constant 0 : i32
    %17 = vector.broadcast %c0_i32_5 : i32 to vector<32x128xi32>
    %18 = arith.cmpi ne, %16, %17 : vector<32x128xi32>
    %c0_i32_6 = arith.constant 0 : i32
    %19 = vector.broadcast %c0_i32_6 : i32 to vector<32x128xi32>
    %20 = arith.cmpi slt, %16, %19 : vector<32x128xi32>
    %c0_i32_7 = arith.constant 0 : i32
    %21 = arith.cmpi slt, %14, %c0_i32_7 : i32
    %22 = vector.broadcast %21 : i1 to vector<32x128xi1>
    %23 = vector.broadcast %22 : vector<32x128xi1> to vector<32x128xi1>
    %24 = arith.xori %20, %23 : vector<32x128xi1>
    %25 = arith.andi %24, %18 : vector<32x128xi1>
    %26 = vector.broadcast %14 : i32 to vector<32x128xi32>
    %27 = arith.addi %16, %26 : vector<32x128xi32>
    %28 = arith.select %25, %27, %16 : vector<32x128xi1>, vector<32x128xi32>
    %cst = arith.constant dense<0.000000e+00> : vector<2x128xf32>
    %29 = tpu.matmul %1, %3, %cst {dimension_numbers = #tpu.dot_dimension_numbers<[1], [0], [0], [1], [0, 0, 1, 1], [], []>} : vector<2x128xf32>, vector<128x128xf32>, vector<2x128xf32> -> vector<2x128xf32>
    %30 = vector.broadcast %11 : vector<1x128xf32> to vector<2x128xf32>
    %31 = arith.addf %29, %30 : vector<2x128xf32>
    %cst_8 = arith.constant 0.000000e+00 : f32
    %32 = vector.broadcast %cst_8 : f32 to vector<2x128xf32>
    %33 = arith.maximumf %31, %32 : vector<2x128xf32>
    %c64_i32 = arith.constant 64 : i32
    %34 = tpu.dynamic_rotate %33 by %c64_i32 dim 1 : vector<2x128xf32>, i32 -> vector<2x128xf32>
    %35 = arith.addf %33, %34 : vector<2x128xf32>
    %c32_i32 = arith.constant 32 : i32
    %36 = tpu.dynamic_rotate %35 by %c32_i32 dim 1 : vector<2x128xf32>, i32 -> vector<2x128xf32>
    %37 = arith.addf %35, %36 : vector<2x128xf32>
    %c16_i32_9 = arith.constant 16 : i32
    %38 = tpu.dynamic_rotate %37 by %c16_i32_9 dim 1 : vector<2x128xf32>, i32 -> vector<2x128xf32>
    %39 = arith.addf %37, %38 : vector<2x128xf32>
    %c8_i32 = arith.constant 8 : i32
    %40 = tpu.dynamic_rotate %39 by %c8_i32 dim 1 : vector<2x128xf32>, i32 -> vector<2x128xf32>
    %41 = arith.addf %39, %40 : vector<2x128xf32>
    %42 = vector.extract_strided_slice %41 {offsets = [0, 0], sizes = [1, 128], strides = [1, 1]} : vector<2x128xf32> to vector<1x128xf32>
    %43 = vector.shape_cast %42 : vector<1x128xf32> to vector<1x128xf32>
    %44 = vector.broadcast %43 : vector<1x128xf32> to vector<16x128xf32>
    %45 = vector.extract_strided_slice %41 {offsets = [1, 0], sizes = [1, 128], strides = [1, 1]} : vector<2x128xf32> to vector<1x128xf32>
    %46 = vector.shape_cast %45 : vector<1x128xf32> to vector<1x128xf32>
    %47 = vector.broadcast %46 : vector<1x128xf32> to vector<16x128xf32>
    %48 = tpu.concatenate %44, %47 in 0 : vector<16x128xf32>, vector<16x128xf32> -> vector<32x128xf32>
    %c0_10 = arith.constant 0 : index
    %c0_11 = arith.constant 0 : index
    %49 = vector.load %arg3[%c0_10, %c0_11] : memref<1280x128xbf16, #tpu.memory_space<vmem>>, vector<384x128xbf16>
    %c1_i32_12 = arith.constant 1 : i32
    %50 = tpu.dynamic_rotate %0 by %c1_i32_12 dim 0 : vector<32x128xf32>, i32 -> vector<32x128xf32>
    %c1_i32_13 = arith.constant 1 : i32
    %51 = vector.broadcast %c1_i32_13 : i32 to vector<32x128xi32>
    %52 = arith.cmpi sge, %28, %51 : vector<32x128xi32>
    %cst_14 = arith.constant 0.000000e+00 : f32
    %53 = vector.broadcast %cst_14 : f32 to vector<32x128xf32>
    %54 = arith.select %52, %50, %53 : vector<32x128xi1>, vector<32x128xf32>
    %c31_i32 = arith.constant 31 : i32
    %55 = tpu.dynamic_rotate %0 by %c31_i32 dim 0 : vector<32x128xf32>, i32 -> vector<32x128xf32>
    %c15_i32 = arith.constant 15 : i32
    %56 = vector.broadcast %c15_i32 : i32 to vector<32x128xi32>
    %57 = arith.cmpi slt, %28, %56 : vector<32x128xi32>
    %cst_15 = arith.constant 0.000000e+00 : f32
    %58 = vector.broadcast %cst_15 : f32 to vector<32x128xf32>
    %59 = arith.select %57, %55, %58 : vector<32x128xi1>, vector<32x128xf32>
    %60 = tpu.concatenate %54, %0, %59 in 1 : vector<32x128xf32>, vector<32x128xf32>, vector<32x128xf32> -> vector<32x384xf32>
    %61 = arith.truncf %60 : vector<32x384xf32> to vector<32x384xbf16>
    %cst_16 = arith.constant dense<0.000000e+00> : vector<32x128xf32>
    %62 = tpu.matmul %61, %49, %cst_16 {dimension_numbers = #tpu.dot_dimension_numbers<[1], [0], [0], [1], [0, 0, 1, 1], [], []>} : vector<32x384xbf16>, vector<384x128xbf16>, vector<32x128xf32> -> vector<32x128xf32>
    %63 = vector.broadcast %4 : vector<1x128xf32> to vector<32x128xf32>
    %64 = arith.addf %62, %63 : vector<32x128xf32>
    %cst_17 = arith.constant 0.000000e+00 : f32
    %65 = vector.broadcast %cst_17 : f32 to vector<32x128xf32>
    %66 = arith.maximumf %64, %65 : vector<32x128xf32>
    %cst_18 = arith.constant dense<0.000000e+00> : vector<128xf32>
    %67 = vector.multi_reduction <add>, %66, %cst_18 [0] : vector<32x128xf32> to vector<128xf32>
    %68 = vector.shape_cast %67 : vector<128xf32> to vector<1x128xf32>
    %c64_i32_19 = arith.constant 64 : i32
    %69 = tpu.dynamic_rotate %68 by %c64_i32_19 dim 1 : vector<1x128xf32>, i32 -> vector<1x128xf32>
    %70 = arith.addf %68, %69 : vector<1x128xf32>
    %c32_i32_20 = arith.constant 32 : i32
    %71 = tpu.dynamic_rotate %70 by %c32_i32_20 dim 1 : vector<1x128xf32>, i32 -> vector<1x128xf32>
    %72 = arith.addf %70, %71 : vector<1x128xf32>
    %c16_i32_21 = arith.constant 16 : i32
    %73 = tpu.dynamic_rotate %72 by %c16_i32_21 dim 1 : vector<1x128xf32>, i32 -> vector<1x128xf32>
    %74 = arith.addf %72, %73 : vector<1x128xf32>
    %c8_i32_22 = arith.constant 8 : i32
    %75 = tpu.dynamic_rotate %74 by %c8_i32_22 dim 1 : vector<1x128xf32>, i32 -> vector<1x128xf32>
    %76 = arith.addf %74, %75 : vector<1x128xf32>
    %cst_23 = arith.constant 0.001953125 : f32
    %77 = vector.broadcast %cst_23 : f32 to vector<1x128xf32>
    %78 = arith.mulf %76, %77 : vector<1x128xf32>
    %79 = arith.mulf %66, %66 : vector<32x128xf32>
    %cst_24 = arith.constant dense<0.000000e+00> : vector<128xf32>
    %80 = vector.multi_reduction <add>, %79, %cst_24 [0] : vector<32x128xf32> to vector<128xf32>
    %81 = vector.shape_cast %80 : vector<128xf32> to vector<1x128xf32>
    %c64_i32_25 = arith.constant 64 : i32
    %82 = tpu.dynamic_rotate %81 by %c64_i32_25 dim 1 : vector<1x128xf32>, i32 -> vector<1x128xf32>
    %83 = arith.addf %81, %82 : vector<1x128xf32>
    %c32_i32_26 = arith.constant 32 : i32
    %84 = tpu.dynamic_rotate %83 by %c32_i32_26 dim 1 : vector<1x128xf32>, i32 -> vector<1x128xf32>
    %85 = arith.addf %83, %84 : vector<1x128xf32>
    %c16_i32_27 = arith.constant 16 : i32
    %86 = tpu.dynamic_rotate %85 by %c16_i32_27 dim 1 : vector<1x128xf32>, i32 -> vector<1x128xf32>
    %87 = arith.addf %85, %86 : vector<1x128xf32>
    %c8_i32_28 = arith.constant 8 : i32
    %88 = tpu.dynamic_rotate %87 by %c8_i32_28 dim 1 : vector<1x128xf32>, i32 -> vector<1x128xf32>
    %89 = arith.addf %87, %88 : vector<1x128xf32>
    %cst_29 = arith.constant 0.001953125 : f32
    %90 = vector.broadcast %cst_29 : f32 to vector<1x128xf32>
    %91 = arith.mulf %89, %90 : vector<1x128xf32>
    %92 = arith.mulf %78, %78 : vector<1x128xf32>
    %93 = arith.subf %91, %92 : vector<1x128xf32>
    %cst_30 = arith.constant 9.99999974E-6 : f32
    %94 = vector.broadcast %cst_30 : f32 to vector<1x128xf32>
    %95 = arith.addf %93, %94 : vector<1x128xf32>
    %96 = math.rsqrt %95 : vector<1x128xf32>
    %97 = vector.broadcast %78 : vector<1x128xf32> to vector<32x128xf32>
    %98 = arith.subf %66, %97 : vector<32x128xf32>
    %99 = vector.broadcast %96 : vector<1x128xf32> to vector<32x128xf32>
    %100 = arith.mulf %98, %99 : vector<32x128xf32>
    %101 = vector.broadcast %5 : vector<1x128xf32> to vector<32x128xf32>
    %102 = arith.mulf %100, %101 : vector<32x128xf32>
    %103 = vector.broadcast %6 : vector<1x128xf32> to vector<32x128xf32>
    %104 = arith.addf %102, %103 : vector<32x128xf32>
    %105 = arith.addf %104, %48 : vector<32x128xf32>
    %c384 = arith.constant 384 : index
    %c0_31 = arith.constant 0 : index
    %106 = vector.load %arg3[%c384, %c0_31] : memref<1280x128xbf16, #tpu.memory_space<vmem>>, vector<384x128xbf16>
    %c1_i32_32 = arith.constant 1 : i32
    %107 = tpu.dynamic_rotate %105 by %c1_i32_32 dim 0 : vector<32x128xf32>, i32 -> vector<32x128xf32>
    %c1_i32_33 = arith.constant 1 : i32
    %108 = vector.broadcast %c1_i32_33 : i32 to vector<32x128xi32>
    %109 = arith.cmpi sge, %28, %108 : vector<32x128xi32>
    %cst_34 = arith.constant 0.000000e+00 : f32
    %110 = vector.broadcast %cst_34 : f32 to vector<32x128xf32>
    %111 = arith.select %109, %107, %110 : vector<32x128xi1>, vector<32x128xf32>
    %c31_i32_35 = arith.constant 31 : i32
    %112 = tpu.dynamic_rotate %105 by %c31_i32_35 dim 0 : vector<32x128xf32>, i32 -> vector<32x128xf32>
    %c15_i32_36 = arith.constant 15 : i32
    %113 = vector.broadcast %c15_i32_36 : i32 to vector<32x128xi32>
    %114 = arith.cmpi slt, %28, %113 : vector<32x128xi32>
    %cst_37 = arith.constant 0.000000e+00 : f32
    %115 = vector.broadcast %cst_37 : f32 to vector<32x128xf32>
    %116 = arith.select %114, %112, %115 : vector<32x128xi1>, vector<32x128xf32>
    %117 = tpu.concatenate %111, %105, %116 in 1 : vector<32x128xf32>, vector<32x128xf32>, vector<32x128xf32> -> vector<32x384xf32>
    %118 = arith.truncf %117 : vector<32x384xf32> to vector<32x384xbf16>
    %cst_38 = arith.constant dense<0.000000e+00> : vector<32x128xf32>
    %119 = tpu.matmul %118, %106, %cst_38 {dimension_numbers = #tpu.dot_dimension_numbers<[1], [0], [0], [1], [0, 0, 1, 1], [], []>} : vector<32x384xbf16>, vector<384x128xbf16>, vector<32x128xf32> -> vector<32x128xf32>
    %120 = vector.broadcast %7 : vector<1x128xf32> to vector<32x128xf32>
    %121 = arith.addf %119, %120 : vector<32x128xf32>
    %cst_39 = arith.constant 0.000000e+00 : f32
    %122 = vector.broadcast %cst_39 : f32 to vector<32x128xf32>
    %123 = arith.maximumf %121, %122 : vector<32x128xf32>
    %cst_40 = arith.constant dense<0.000000e+00> : vector<128xf32>
    %124 = vector.multi_reduction <add>, %123, %cst_40 [0] : vector<32x128xf32> to vector<128xf32>
    %125 = vector.shape_cast %124 : vector<128xf32> to vector<1x128xf32>
    %c64_i32_41 = arith.constant 64 : i32
    %126 = tpu.dynamic_rotate %125 by %c64_i32_41 dim 1 : vector<1x128xf32>, i32 -> vector<1x128xf32>
    %127 = arith.addf %125, %126 : vector<1x128xf32>
    %c32_i32_42 = arith.constant 32 : i32
    %128 = tpu.dynamic_rotate %127 by %c32_i32_42 dim 1 : vector<1x128xf32>, i32 -> vector<1x128xf32>
    %129 = arith.addf %127, %128 : vector<1x128xf32>
    %c16_i32_43 = arith.constant 16 : i32
    %130 = tpu.dynamic_rotate %129 by %c16_i32_43 dim 1 : vector<1x128xf32>, i32 -> vector<1x128xf32>
    %131 = arith.addf %129, %130 : vector<1x128xf32>
    %c8_i32_44 = arith.constant 8 : i32
    %132 = tpu.dynamic_rotate %131 by %c8_i32_44 dim 1 : vector<1x128xf32>, i32 -> vector<1x128xf32>
    %133 = arith.addf %131, %132 : vector<1x128xf32>
    %cst_45 = arith.constant 0.001953125 : f32
    %134 = vector.broadcast %cst_45 : f32 to vector<1x128xf32>
    %135 = arith.mulf %133, %134 : vector<1x128xf32>
    %136 = arith.mulf %123, %123 : vector<32x128xf32>
    %cst_46 = arith.constant dense<0.000000e+00> : vector<128xf32>
    %137 = vector.multi_reduction <add>, %136, %cst_46 [0] : vector<32x128xf32> to vector<128xf32>
    %138 = vector.shape_cast %137 : vector<128xf32> to vector<1x128xf32>
    %c64_i32_47 = arith.constant 64 : i32
    %139 = tpu.dynamic_rotate %138 by %c64_i32_47 dim 1 : vector<1x128xf32>, i32 -> vector<1x128xf32>
    %140 = arith.addf %138, %139 : vector<1x128xf32>
    %c32_i32_48 = arith.constant 32 : i32
    %141 = tpu.dynamic_rotate %140 by %c32_i32_48 dim 1 : vector<1x128xf32>, i32 -> vector<1x128xf32>
    %142 = arith.addf %140, %141 : vector<1x128xf32>
    %c16_i32_49 = arith.constant 16 : i32
    %143 = tpu.dynamic_rotate %142 by %c16_i32_49 dim 1 : vector<1x128xf32>, i32 -> vector<1x128xf32>
    %144 = arith.addf %142, %143 : vector<1x128xf32>
    %c8_i32_50 = arith.constant 8 : i32
    %145 = tpu.dynamic_rotate %144 by %c8_i32_50 dim 1 : vector<1x128xf32>, i32 -> vector<1x128xf32>
    %146 = arith.addf %144, %145 : vector<1x128xf32>
    %cst_51 = arith.constant 0.001953125 : f32
    %147 = vector.broadcast %cst_51 : f32 to vector<1x128xf32>
    %148 = arith.mulf %146, %147 : vector<1x128xf32>
    %149 = arith.mulf %135, %135 : vector<1x128xf32>
    %150 = arith.subf %148, %149 : vector<1x128xf32>
    %cst_52 = arith.constant 9.99999974E-6 : f32
    %151 = vector.broadcast %cst_52 : f32 to vector<1x128xf32>
    %152 = arith.addf %150, %151 : vector<1x128xf32>
    %153 = math.rsqrt %152 : vector<1x128xf32>
    %154 = vector.broadcast %135 : vector<1x128xf32> to vector<32x128xf32>
    %155 = arith.subf %123, %154 : vector<32x128xf32>
    %156 = vector.broadcast %153 : vector<1x128xf32> to vector<32x128xf32>
    %157 = arith.mulf %155, %156 : vector<32x128xf32>
    %158 = vector.broadcast %8 : vector<1x128xf32> to vector<32x128xf32>
    %159 = arith.mulf %157, %158 : vector<32x128xf32>
    %160 = vector.broadcast %9 : vector<1x128xf32> to vector<32x128xf32>
    %161 = arith.addf %159, %160 : vector<32x128xf32>
    %c0_53 = arith.constant 0 : index
    %c0_54 = arith.constant 0 : index
    %162 = vector.load %arg2[%c0_53, %c0_54] : memref<64x32xbf16, #tpu.memory_space<vmem>>, vector<64x32xbf16>
    %163 = arith.truncf %161 : vector<32x128xf32> to vector<32x128xbf16>
    %cst_55 = arith.constant dense<0.000000e+00> : vector<64x128xf32>
    %164 = tpu.matmul %162, %163, %cst_55 {dimension_numbers = #tpu.dot_dimension_numbers<[1], [0], [0], [1], [0, 0, 1, 1], [], []>} : vector<64x32xbf16>, vector<32x128xbf16>, vector<64x128xf32> -> vector<64x128xf32>
    %165 = vector.extract_strided_slice %164 {offsets = [0, 0], sizes = [16, 128], strides = [1, 1]} : vector<64x128xf32> to vector<16x128xf32>
    %166 = vector.extract_strided_slice %164 {offsets = [16, 0], sizes = [16, 128], strides = [1, 1]} : vector<64x128xf32> to vector<16x128xf32>
    %167 = vector.extract_strided_slice %164 {offsets = [32, 0], sizes = [16, 128], strides = [1, 1]} : vector<64x128xf32> to vector<16x128xf32>
    %168 = vector.extract_strided_slice %164 {offsets = [48, 0], sizes = [16, 128], strides = [1, 1]} : vector<64x128xf32> to vector<16x128xf32>
    %169 = tpu.concatenate %165, %166, %167, %168 in 1 : vector<16x128xf32>, vector<16x128xf32>, vector<16x128xf32>, vector<16x128xf32> -> vector<16x512xf32>
    %170 = arith.truncf %169 : vector<16x512xf32> to vector<16x512xbf16>
    %c768 = arith.constant 768 : index
    %c0_56 = arith.constant 0 : index
    %171 = vector.load %arg3[%c768, %c0_56] : memref<1280x128xbf16, #tpu.memory_space<vmem>>, vector<512x128xbf16>
    %cst_57 = arith.constant dense<0.000000e+00> : vector<16x128xf32>
    %172 = tpu.matmul %170, %171, %cst_57 {dimension_numbers = #tpu.dot_dimension_numbers<[1], [0], [0], [1], [0, 0, 1, 1], [], []>} : vector<16x512xbf16>, vector<512x128xbf16>, vector<16x128xf32> -> vector<16x128xf32>
    %173 = vector.broadcast %10 : vector<1x128xf32> to vector<16x128xf32>
    %174 = arith.addf %172, %173 : vector<16x128xf32>
    %c0_58 = arith.constant 0 : index
    %c0_59 = arith.constant 0 : index
    %175 = vector.load %arg4[%c0_58, %c0_59] : memref<16x128xf32, #tpu.memory_space<vmem>>, vector<16x128xf32>
    tpu.vector_store %arg4[%c0_58, %c0_59], %174 {strides = array<i32>} : memref<16x128xf32, #tpu.memory_space<vmem>>, vector<16x128xf32>,
    return
  }
}

</mosaic_0001>

<bundles_post_ra>
// kernel: block_forward_prepared.1
= control target key start
LH: loop header
LB: loop body
LE: loop exit
PB: predicated region body
PF: predicated region fallthrough
CT: control target
= control target key end

     0   :  { %9 = vsyncpa [#allocation3], 0  ;;  %s1962_s15 = smov [#allocation2]   ;;  %s2504_s0 = inlined_call_operand.vmem [shape: f32[34,128], index: 0, kind: input, shape index: {}]   ;;  %s2505_s1 = inlined_call_operand.hbm [shape: f32[136,128], index: 1, kind: input, shape index: {}]   ;;  %s2506_s2 = inlined_call_operand.vmem [shape: bf16[64,32], index: 2, kind: input, shape index: {}]   ;;  %s2507_s3 = inlined_call_operand.vmem [shape: bf16[1280,128], index: 3, kind: input, shape index: {}]   ;;  %s2508_s4 = inlined_call_operand.vmem [shape: f32[16,128], index: 4, kind: output, shape index: {}]  }
   0x1   :  { %s17_s16 = sshll.u32 %s1962_s15, 4  ;;  %s18_s16 = int_to_ptr.vmem [resolvable:$true] %s17_s16 }
   0x2   :  { %s1948_s17 = scalar_lea.vmem %s18_s16, 2176  ;;  %p1953_p1 = scmp.lt.s32.totalorder %s18_s16, %s18_s16 }
   0x3   :  { %p1949_p0 = scmp.ne.s32.totalorder %s18_s16, %s1948_s17  ;;  %p1954_p2 = scmp.lt.s32.totalorder %s1948_s17, %s1948_s17 }
   0x5   :  { %p1955_p3 = por %p1954_p2, %p1953_p1 }
   0x7   :  { %p1956_p4 = pnand %p1955_p3, %p1949_p0 }
   0x9   :  { %1959 = shalt.err (!%p1956_p4)
}
   0xa   :  { %s1963_s18 = smov 128   ;;  %s1964_s19 = smov 8  }
   0xb   :  { %23 = dma.hbm_to_vmem [thread:$0]  %s2505_s1, 2176, %s18_s16, [#allocation3], %s1963_s18, %s1963_s18, %s1964_s19  }
   0xc   :  { %1960 = dma.done.wait [#allocation3], 2176  }
   0xd   :  { %1961 = vsyncadd [#allocation3], 4294965120  ;;  %v1965_v0 = vmov 0.0   ;;  %vm1966_vm0 = vmmov 0   ;;  %v53_v1 = vld [vmem:[#allocation2 + $0x80] sm:$0xff]  ;;  %v52_v2 = vld [vmem:[#allocation2 + $0x78] sm:$0xff]  ;;  %v54_v17 = vlaneseq }
   0xe   :  { %1756 = vmatprep.subr.mxu0 %v1965_v0  ;;  %1788 = vmatprep.mubr.msk.f32.mxu0 %vm1966_vm0, %v1965_v0  ;;  %v51_v3 = vld [vmem:[#allocation2 + $0x70] sm:$0xff]  ;;  %v1852_v4 = vld [vmem:[%s2507_s3 + $0x78] sm:$0xff]   ;;  %v50_v5 = vld [vmem:[#allocation2 + $0x68] sm:$0xff]  ;;  %vm1967_vm5 = vmmov 1   ;;  %s1968_s26 = smov 64   ;;  %s1969_s27 = smov 32  }
   0xf   :  { %1757 = vmatpush3.msra.mxu0 %v53_v1  ;;  %1630 = vmatprep.subr.bf16.mxu1 %v1852_v4  ;;  %v1853_v6 = vld [vmem:[%s2507_s3 + $0x38] sm:$0xff]   ;;  %v49_v7 = vld [vmem:[#allocation2 + $0x60] sm:$0xff]  ;;  %v1854_v8 = vld [vmem:[%s2507_s3 + $0x70] sm:$0xff]   ;;  %v2037_v22 = vshrl.u32 %v54_v17, 7  ;;  %s1970_s28 = smov 16   ;;  %vm1070_vm12 = vcmask 261120  }
  0x10   :  { %1758 = vmatprep.subr.mxu0 %v1965_v0  ;;  %1631 = vmatpush3.bf16.msra.mxu1 %v1853_v6  ;;  %v1855_v9 = vld [vmem:[%s2507_s3 + $0x30] sm:$0xff]   ;;  %v48_v10 = vld [vmem:[#allocation2 + $0x58] sm:$0xff]  ;;  %v1856_v11 = vld [vmem:[%s2507_s3 + $0x68] sm:$0xff]  }
  0x11   :  { %1759 = vmatpush3.msra.mxu0 %v52_v2  ;;  %1632 = vmatprep.subr.bf16.mxu1 %v1854_v8  ;;  %v47_v12 = vld [vmem:[#allocation2 + $0x50] sm:$0xff]  ;;  %v46_v13 = vld [vmem:[#allocation2 + $0x48] sm:$0xff]  ;;  %v1858_v15 = vld [vmem:[%s2507_s3 + $0x60] sm:$0xff]   ;;  %v56_v25 = vadd.s32 8, %v2037_v22  ;;  %vm271_vm1 = vcmp.lt.s32.totalorder %v2037_v22, 7  ;;  %v63_v28 = vand.u32 15, %v2037_v22 }
  0x12   :  { %1760 = vmatprep.subr.mxu0 %v1965_v0  ;;  %v1857_v14 = vld [vmem:[%s2507_s3 + $0x28] sm:$0xff]   ;;  %v45_v16 = vld [vmem:[#allocation2 + $0x40] sm:$0xff]  ;;  %v44_v18 = vld [vmem:[#allocation2 + $0x38] sm:$0xff]  ;;  %v57_v30 = vadd.s32 16, %v2037_v22  ;;  %vm254_vm2 = vcmp.lt.s32.totalorder %v2037_v22, 1  ;;  %v2061_v35 = vadd.s32 24, %v2037_v22 }
  0x13   :  { %1761 = vmatpush3.msra.mxu0 %v51_v3  ;;  %v1859_v19 = vld [vmem:[%s2507_s3 + $0x20] sm:$0xff]   ;;  %v1861_v20 = vld [vmem:[%s2507_s3 + $0x58] sm:$0xff]   ;;  %v43_v21 = vld [vmem:[#allocation2 + $0x30] sm:$0xff]  ;;  %v70_v32 = vand.u32 15, %v56_v25  ;;  %vm2069_vm3 = vcmp.ge.s32.totalorder %v63_v28, 1  ;;  %v708_v59 = vsub.s32 3, %v2037_v22 }
  0x14   :  { %1762 = vmatprep.subr.mxu0 %v1965_v0  ;;  %1633 = vmatpush3.bf16.msra.mxu1 %v1855_v9  ;;  %v42_v23 = vld [vmem:[#allocation2 + $0x28] sm:$0xff]  ;;  %v1862_v24 = vld [vmem:[%s2507_s3 + $0x18] sm:$0xff]   ;;  %v1864_v26 = vld [vmem:[%s2507_s3 + $0x50] sm:$0xff]   ;;  %v77_v39 = vand.u32 15, %v57_v30  ;;  %v84_v55 = vand.u32 15, %v2061_v35 }
  0x15   :  { %1763 = vmatpush3.msra.mxu0 %v50_v5  ;;  %1634 = vmatprep.subr.bf16.mxu1 %v1856_v11  ;;  %v41_v27 = vld [vmem:[#allocation2 + $0x20] sm:$0xff]  ;;  %v40_v29 = vld [vmem:[#allocation2 + $0x18] sm:$0xff]  ;;  %v1865_v31 = vld [vmem:[%s2507_s3 + $0x10] sm:$0xff]   ;;  %vm2089_vm4 = vcmp.lt.s32.totalorder %v70_v32, 15 }
  0x16   :  { %1764 = vmatprep.subr.mxu0 %v1965_v0  ;;  %v1867_v33 = vld [vmem:[%s2507_s3 + $0x48] sm:$0xff]   ;;  %v39_v34 = vld [vmem:[#allocation2 + $0x10] sm:$0xff]  ;;  %v2067_v37 = vld [vmem:[%s2504_s0] sm:$0xff]  ;;  %vm261_vm7 = vcmp.ge.s32.totalorder %v77_v39, 1  ;;  %vm279_vm10 = vcmp.lt.s32.totalorder %v84_v55, 15 }
  0x17   :  { %1765 = vmatpush3.msra.mxu0 %v49_v7  ;;  %v38_v36 = vld [vmem:[#allocation2 + $0x8] sm:$0xff]  ;;  %v36_v40 = vld [vmem:[%s2504_s0 + $0x20] sm:$0x3]  ;;  %v2085_v43 = vld [vmem:[%s2504_s0 + $0x18] sm:$0xff]  ;;  %v250_v44 = vrot.slane %v2067_v37, 7  ;;  %v267_v45 = vrot.slane %v2067_v37, 1 }
  0x18   :  { %1766 = vmatprep.subr.mxu0 %v1965_v0  ;;  %1635 = vmatpush3.bf16.msra.mxu1 %v1857_v14  ;;  %v1868_v41 = vld [vmem:[%s2507_s3 + $0x8] sm:$0xff]   ;;  %v1860_v47 = vld [vmem:[%s2507_s3 + $0xb8] sm:$0xff]   ;;  %v1863_v48 = vld [vmem:[%s2507_s3 + $0xb0] sm:$0xff]   ;;  %v253_v53 = vrot.slane %v2085_v43, 7  ;;  %v270_v63 = vrot.slane %v2085_v43, 1 }
  0x19   :  { %1767 = vmatpush3.msra.mxu0 %v48_v10  ;;  %1636 = vmatprep.subr.bf16.mxu1 %v1858_v15  ;;  %v33_v42 = vld [vmem:[%s2504_s0 + $0x8] sm:$0xff]  ;;  %v1870_v52 = vld [vmem:[%s2507_s3 + $0x40] sm:$0xff]   ;;  %v34_v54 = vld [vmem:[%s2504_s0 + $0x10] sm:$0xff] }
  0x1a   :  { %1768 = vmatprep.subr.mxu0 %v1965_v0  ;;  %v251_v49 = vrot.slane %v33_v42, 7  ;;  %v268_v50 = vrot.slane %v33_v42, 1  ;;  %v285_v51 = vpack.c.bf16 %v33_v42, %v2067_v37  ;;  %v1871_v56 = vld [vmem:[%s2507_s3] sm:$0xff]   ;;  %v258_v58 = vsel %vm254_vm2, %v253_v53, %v250_v44  ;;  %vm2120_vm6 = vmpackc.low %vm1967_vm5, %vm2069_vm3  ;;  %v1866_v62 = vld [vmem:[%s2507_s3 + $0xa8] sm:$0xff]  }
  0x1b   :  { %1769 = vmatpush3.msra.mxu0 %v47_v12  ;;  %v269_v60 = vrot.slane %v34_v54, 1  ;;  %vm2135_vm8 = vmpackc.low %vm2089_vm4, %vm1967_vm5  ;;  %v288_v5 = vpack.c.bf16 %v2085_v43, %v34_v54  ;;  %v1869_v7 = vld [vmem:[%s2507_s3 + $0xa0] sm:$0xff]   ;;  %v1872_v10 = vld [vmem:[%s2507_s3 + $0x98] sm:$0xff]  }
  0x1c   :  { %1770 = vmatprep.subr.mxu0 %v1965_v0  ;;  %1637 = vmatpush3.bf16.msra.mxu1 %v1859_v19  ;;  %v257_v57 = vsel %vm254_vm2, %v250_v44, %v251_v49  ;;  %v274_v61 = vsel %vm271_vm1, %v267_v45, %v268_v50  ;;  %vm2143_vm9 = vmpackc.low %vm1967_vm5, %vm261_vm7  ;;  %v1873_v12 = vld [vmem:[%s2507_s3 + $0x90] sm:$0xff]   ;;  %v1875_v14 = vld [vmem:[%s2507_s3 + $0x80] sm:$0xff]   ;;  %v109_v19 = vsub.s32 7, %v2037_v22 }
  0x1d   :  { %1771 = vmatpush3.msra.mxu0 %v46_v13  ;;  %1638 = vmatprep.subr.bf16.mxu1 %v1861_v20  ;;  %v273_v2 = vsel %vm271_vm1, %v268_v50, %v269_v60  ;;  %v1526_v3 = vpack.c.bf16 %v257_v57, %v258_v58  ;;  %v1874_v13 = vld [vmem:[%s2507_s3 + $0x88] sm:$0xff]   ;;  %vm2173_vm11 = vmpackc.low %vm279_vm10, %vm1967_vm5  ;;  %v272_v17 = vsel %vm271_vm1, %v269_v60, %v270_v63  ;;  %v2186_v20 = vld [vmem:[#allocation2] sm:$0xff] }
  0x1e   :  { %1772 = vmatprep.subr.mxu0 %v1965_v0  ;;  %470 = vmatprep.mubr.bf16.mxu1 %v285_v51  ;;  %v1532_v4 = vpack.c.bf16 %v273_v2, %v274_v61 }
  0x1f   :  { %1773 = vmatpush3.msra.mxu0 %v45_v16  ;;  %v275_v16 = vsel %vm271_vm1, %v270_v63, %v267_v45 }
  0x20   :  { %1774 = vmatprep.subr.mxu0 %v1965_v0  ;;  %1639 = vmatpush3.bf16.msra.mxu1 %v1862_v24 }
  0x21   :  { %1775 = vmatpush3.msra.mxu0 %v44_v18  ;;  %1640 = vmatprep.subr.bf16.mxu1 %v1864_v26  ;;  %v1535_v18 = vpack.c.bf16 %v275_v16, %v272_v17 }
  0x22   :  { %1776 = vmatprep.subr.mxu0 %v1965_v0 }
  0x23   :  { %1777 = vmatpush3.msra.mxu0 %v43_v21  ;;  %v110_v21 = vrot.slane %v2186_v20, %v109_v19 }
  0x24   :  { %1778 = vmatprep.subr.mxu0 %v1965_v0  ;;  %1641 = vmatpush3.bf16.msra.mxu1 %v1865_v31 }
  0x25   :  { %1779 = vmatpush3.msra.mxu0 %v42_v23  ;;  %1642 = vmatprep.subr.bf16.mxu1 %v1867_v33 }
  0x26   :  { %1780 = vmatprep.subr.mxu0 %v1965_v0 }
  0x27   :  { %1781 = vmatpush3.msra.mxu0 %v41_v27 }
  0x28   :  { %1782 = vmatprep.subr.mxu0 %v1965_v0  ;;  %1643 = vmatpush3.bf16.msra.mxu1 %v1868_v41 }
  0x29   :  { %1783 = vmatpush3.msra.mxu0 %v40_v29  ;;  %1644 = vmatprep.subr.bf16.mxu1 %v1870_v52 }
  0x2a   :  { %1784 = vmatprep.subr.mxu0 %v1965_v0 }
  0x2b   :  { %1785 = vmatpush3.msra.mxu0 %v39_v34  ;;  %v2196_v34 = vsub.s32 0, %v2037_v22 }
  0x2c   :  { %1786 = vmatprep.subr.mxu0 %v1965_v0  ;;  %v252_v0 = vrot.slane %v34_v54, 7  ;;  %1645 = vmatpush3.bf16.msra.mxu1 %v1871_v56 }
  0x2d   :  { %1787 = vmatpush3.msra.mxu0 %v38_v36  ;;  %v293_v38 = vrot.slane %v2186_v20, %v2196_v34 }
  0x2e   :  { %1789 = vmatmul.mubr.f32.vlgmr.msra.gmra.mxu0 %v36_v40  ;;  %1791 = vmatprep.subr.bf16.mxu0 %v1860_v47  ;;  %v255_v8 = vsel %vm254_vm2, %v252_v0, %v253_v53  ;;  %v256_v9 = vsel %vm254_vm2, %v251_v49, %v252_v0 }
  0x2f   :  { %1792 = vmatpush3.bf16.msra.mxu0 %v1860_v47  ;;  %1807 = vmatprep.mubr.msk.bf16.mxu0 %vm2135_vm8, %v1532_v4  ;;  %v1529_v11 = vpack.c.bf16 %v255_v8, %v256_v9 }
  0x30   :  { %1793 = vmatprep.subr.bf16.mxu0 %v1863_v48  ;;  %1527 = vmatmul.mubr.msk.bf16.vlgmr.msra.gmra.mxu1 %vm2120_vm6, %v1526_v3 }
  0x31   :  { %478 = vmatprep.mubr.bf16.mxu1 %v288_v5 }
  0x33   :  { %1794 = vmatpush3.bf16.msra.mxu0 %v1863_v48 }
  0x34   :  { %1795 = vmatprep.subr.bf16.mxu0 %v1866_v62 }
  0x37   :  { %1796 = vmatpush3.bf16.msra.mxu0 %v1866_v62 }
  0x38   :  { %1797 = vmatprep.subr.bf16.mxu0 %v1869_v7  ;;  %1530 = vmatmul.mubr.msk.bf16.gmra.mxu1 %vm2143_vm9, %v1529_v11 }
  0x3b   :  { %1798 = vmatpush3.bf16.msra.mxu0 %v1869_v7 }
  0x3c   :  { %1799 = vmatprep.subr.bf16.mxu0 %v1872_v10 }
  0x3f   :  { %1800 = vmatpush3.bf16.msra.mxu0 %v1872_v10 }
  0x40   :  { %1801 = vmatprep.subr.bf16.mxu0 %v1873_v12 }
  0x43   :  { %1802 = vmatpush3.bf16.msra.mxu0 %v1873_v12 }
  0x44   :  { %1803 = vmatprep.subr.bf16.mxu0 %v1874_v13 }
  0x47   :  { %1804 = vmatpush3.bf16.msra.mxu0 %v1874_v13 }
  0x48   :  { %1805 = vmatprep.subr.bf16.mxu0 %v1875_v14 }
  0x4b   :  { %1806 = vmatpush3.bf16.msra.mxu0 %v1875_v14 }
  0x4e   :  { %1808 = vmatmul.mubr.msk.bf16.vlgmr.msra.gmra.mxu0 %vm2173_vm11, %v1535_v18 }
  0xee   :  { %v177_v23 = vpop.f32.mrf.mxu0 }
  0xef   :  { %v2189_v24 = vadd.f32 %v177_v23, %v110_v21 }
  0xf0   :  { %v1790_v25 = vpop.f32.mrf.mxu0  ;;  %v1646_v27 = vpop.f32.mrf.mxu1 }
  0xf1   :  { %v181_v26 = vmax.f32 %v2189_v24, 0.0  ;;  %v1876_v24 = vld [vmem:[%s2507_s3 + $0x138] sm:$0xff]  }
  0xf2   :  { %v1647_v28 = vpop.f32.mrf.mxu1  ;;  %1668 = vmatprep.subr.bf16.mxu1 %v1876_v24 }
  0xf3   :  { %182 = vrot.lane.b32.xlu1 %v181_v26, %s1968_s26  ;;  %v1648_v36 = vadd.f32 %v1647_v28, %v1646_v27 }
  0xf4   :  { %v1649_v29 = vpop.f32.mrf.mxu1 }
  0xf5   :  { %v473_v43 = vadd.f32 %v1648_v36, %v293_v38  ;;  %v1878_v36 = vld [vmem:[%s2507_s3 + $0x178] sm:$0xff]  }
  0xf6   :  { %v1650_v30 = vpop.f32.mrf.mxu1  ;;  %1811 = vmatprep.subr.bf16.mxu0 %v1878_v36 }
  0xf7   :  { %v1651_v41 = vadd.f32 %v1650_v30, %v1649_v29  ;;  %1812 = vmatpush3.bf16.msra.mxu0 %v1878_v36 }
  0xf8   :  { %v1652_v31 = vpop.f32.mrf.mxu1 }
  0xf9   :  { %v476_v49 = vadd.f32 %v1651_v41, %v293_v38  ;;  %v1881_v41 = vld [vmem:[%s2507_s3 + $0x170] sm:$0xff]  }
  0xfa   :  { %v1653_v32 = vpop.f32.mrf.mxu1  ;;  %1813 = vmatprep.subr.bf16.mxu0 %v1881_v41 }
  0xfb   :  { %v1654_v37 = vadd.f32 %v1653_v32, %v1652_v31  ;;  %1814 = vmatpush3.bf16.msra.mxu0 %v1881_v41 }
  0xfc   :  { %v1655_v33 = vpop.f32.mrf.mxu1 }
  0xfd   :  { %v481_v42 = vadd.f32 %v1654_v37, %v293_v38 }
  0xfe   :  { %v1656_v35 = vpop.f32.mrf.mxu1 }
  0xff   :  { %v1657_v39 = vadd.f32 %v1656_v35, %v1655_v33 }
 0x101   :  { %v484_v46 = vadd.f32 %v1657_v39, %v293_v38  ;;  %v1879_v39 = vld [vmem:[%s2507_s3 + $0x130] sm:$0xff]  }
 0x10e   :  { %v1809_v40 = vpop.f32.mrf.mxu0 }
 0x10f   :  { %v530_v48 = vadd.f32 %v1809_v40, %v481_v42  ;;  %v1880_v40 = vld [vmem:[%s2507_s3 + $0xf0] sm:$0xff]  }
 0x110   :  { %v521_v44 = vpop.f32.mrf.mxu0 }
 0x111   :  { %v522_v45 = vadd.f32 %v521_v44, %v473_v43  ;;  %v2202_v54 = vmax.f32 %v530_v48, 0.0  ;;  %v1884_v48 = vld [vmem:[%s2507_s3 + $0x168] sm:$0xff]  }
 0x112   :  { %v1810_v47 = vpop.f32.mrf.mxu0  ;;  %1815 = vmatprep.subr.bf16.mxu0 %v1884_v48 }
 0x113   :  { %v2200_v51 = vmax.f32 %v522_v45, 0.0  ;;  %v533_v52 = vadd.f32 %v1810_v47, %v484_v46  ;;  %v564_v61 = vmul.f32 %v2202_v54, %v2202_v54  ;;  %v1882_v46 = vld [vmem:[%s2507_s3 + $0x128] sm:$0xff]   ;;  %1816 = vmatpush3.bf16.msra.mxu0 %v1884_v48 }
 0x114   :  { %v524_v50 = vpop.f32.mrf.mxu0  ;;  %v1883_v47 = vld [vmem:[%s2507_s3 + $0xe8] sm:$0xff]  }
 0x115   :  { %v525_v53 = vadd.f32 %v524_v50, %v476_v49  ;;  %v562_v56 = vmul.f32 %v2200_v51, %v2200_v51  ;;  %v2208_v57 = vmax.f32 %v533_v52, 0.0  ;;  %v1885_v49 = vld [vmem:[%s2507_s3 + $0x120] sm:$0xff]  }
 0x116   :  { %v1886_v50 = vld [vmem:[%s2507_s3 + $0xe0] sm:$0xff]  }
 0x117   :  { %v2204_v55 = vmax.f32 %v525_v53, 0.0  ;;  %v565_v0 = vmul.f32 %v2208_v57, %v2208_v57  ;;  %v1887_v52 = vld [vmem:[%s2507_s3 + $0x160] sm:$0xff]   ;;  %v1888_v53 = vld [vmem:[%s2507_s3 + $0x118] sm:$0xff]  }
 0x118   :  { %1817 = vmatprep.subr.bf16.mxu0 %v1887_v52 }
 0x119   :  { %v540_v58 = vadd.f32 %v2204_v55, %v2200_v51  ;;  %v563_v60 = vmul.f32 %v2204_v55, %v2204_v55  ;;  %1818 = vmatpush3.bf16.msra.mxu0 %v1887_v52 }
 0x11b   :  { %v541_v62 = vadd.f32 %v540_v58, %v2202_v54  ;;  %v566_v63 = vadd.f32 %v563_v60, %v562_v56  ;;  %v1889_v56 = vld [vmem:[%s2507_s3 + $0xd8] sm:$0xff]   ;;  %v1891_v60 = vld [vmem:[%s2507_s3 + $0x110] sm:$0xff]  }
 0x11c   :  { %v1890_v58 = vld [vmem:[%s2507_s3 + $0x158] sm:$0xff]  }
 0x11d   :  { %v567_v2 = vadd.f32 %v566_v63, %v564_v61  ;;  %v542_v3 = vadd.f32 %v541_v62, %v2208_v57  ;;  %1819 = vmatprep.subr.bf16.mxu0 %v1890_v58  ;;  %v1892_v61 = vld [vmem:[%s2507_s3 + $0xd0] sm:$0xff]   ;;  %v1894_v63 = vld [vmem:[%s2507_s3 + $0x108] sm:$0xff]  }
 0x11e   :  { %1820 = vmatpush3.bf16.msra.mxu0 %v1890_v58  ;;  %v1893_v62 = vld [vmem:[%s2507_s3 + $0x150] sm:$0xff]  }
 0x11f   :  { %v543_v4 = vrot.slane %v542_v3, 4  ;;  %v568_v5 = vadd.f32 %v567_v2, %v565_v0  ;;  %1821 = vmatprep.subr.bf16.mxu0 %v1893_v62  ;;  %v1895_v0 = vld [vmem:[%s2507_s3 + $0xc8] sm:$0xff]  }
 0x120   :  { %v1896_v2 = vld [vmem:[%s2507_s3 + $0x148] sm:$0xff]  }
 0x121   :  { %v544_v7 = vadd.f32 %v543_v4, %v542_v3  ;;  %v569_v8 = vrot.slane %v568_v5, 4  ;;  %v1897_v3 = vld [vmem:[%s2507_s3 + $0x100] sm:$0xff]  }
 0x122   :  { %1822 = vmatpush3.bf16.msra.mxu0 %v1893_v62  ;;  %v1898_v4 = vld [vmem:[%s2507_s3 + $0xc0] sm:$0xff]  }
 0x123   :  { %v545_v9 = vrot.slane %v544_v7, 2  ;;  %v570_v10 = vadd.f32 %v569_v8, %v568_v5  ;;  %1823 = vmatprep.subr.bf16.mxu0 %v1896_v2  ;;  %v1899_v5 = vld [vmem:[%s2507_s3 + $0x140] sm:$0xff]  }
 0x125   :  { %v546_v11 = vadd.f32 %v545_v9, %v544_v7  ;;  %v571_v12 = vrot.slane %v570_v10, 2 }
 0x126   :  { %1824 = vmatpush3.bf16.msra.mxu0 %v1896_v2 }
 0x127   :  { %v547_v13 = vrot.slane %v546_v11, 1  ;;  %v572_v14 = vadd.f32 %v571_v12, %v570_v10  ;;  %1825 = vmatprep.subr.bf16.mxu0 %v1899_v5 }
 0x129   :  { %v548_v16 = vadd.f32 %v547_v13, %v546_v11  ;;  %v573_v17 = vrot.slane %v572_v14, 1 }
 0x12a   :  { %1826 = vmatpush3.bf16.msra.mxu0 %v1899_v5 }
 0x12b   :  { %549 = vrot.lane.b32.xlu0 %v548_v16, %s1968_s26  ;;  %v574_v18 = vadd.f32 %v573_v17, %v572_v14 }
 0x12f   :  { %575 = vrot.lane.b32.xlu0 %v574_v18, %s1968_s26 }
 0x165   :  { %v183_v23 = vpop.permute.xlu1 %182 }
 0x166   :  { %v184_v27 = vadd.f32 %v183_v23, %v181_v26  ;;  %v1877_v26 = vld [vmem:[%s2507_s3 + $0xf8] sm:$0xff]  }
 0x167   :  { %1669 = vmatpush3.bf16.msra.mxu1 %v1877_v26 }
 0x168   :  { %1670 = vmatprep.subr.bf16.mxu1 %v1879_v39 }
 0x16b   :  { %1671 = vmatpush3.bf16.msra.mxu1 %v1880_v40 }
 0x16c   :  { %1672 = vmatprep.subr.bf16.mxu1 %v1882_v46 }
 0x16f   :  { %1673 = vmatpush3.bf16.msra.mxu1 %v1883_v47 }
 0x170   :  { %1674 = vmatprep.subr.bf16.mxu1 %v1885_v49 }
 0x173   :  { %1675 = vmatpush3.bf16.msra.mxu1 %v1886_v50 }
 0x174   :  { %1676 = vmatprep.subr.bf16.mxu1 %v1888_v53 }
 0x177   :  { %1677 = vmatpush3.bf16.msra.mxu1 %v1889_v56 }
 0x178   :  { %1678 = vmatprep.subr.bf16.mxu1 %v1891_v60 }
 0x17b   :  { %1679 = vmatpush3.bf16.msra.mxu1 %v1892_v61 }
 0x17c   :  { %1680 = vmatprep.subr.bf16.mxu1 %v1894_v63 }
 0x17f   :  { %1681 = vmatpush3.bf16.msra.mxu1 %v1895_v0 }
 0x180   :  { %1682 = vmatprep.subr.bf16.mxu1 %v1897_v3 }
 0x183   :  { %1683 = vmatpush3.bf16.msra.mxu1 %v1898_v4 }
 0x19d   :  { %v550_v19 = vpop.permute.xlu0 %549 }
 0x19e   :  { %v551_v21 = vadd.f32 %v550_v19, %v548_v16  ;;  %v618_v19 = vsub.s32 2, %v2037_v22 }
 0x1a0   :  { %552 = vrot.lane.b32.xlu1 %v551_v21, %s1969_s27 }
 0x1a1   :  { %v576_v25 = vpop.permute.xlu0 %575 }
 0x1a2   :  { %v577_v28 = vadd.f32 %v576_v25, %v574_v18  ;;  %v200_v18 = vsub.s32 1, %v2037_v22 }
 0x1a4   :  { %185 = vrot.lane.b32.xlu1 %v184_v27, %s1969_s27  ;;  %578 = vrot.lane.b32.xlu0 %v577_v28, %s1969_s27 }
 0x212   :  { %v553_v29 = vpop.permute.xlu1 %552 }
 0x213   :  { %v554_v30 = vadd.f32 %v553_v29, %v551_v21 }
 0x215   :  { %555 = vrot.lane.b32.xlu0 %v554_v30, %s1970_s28 }
 0x216   :  { %v186_v31 = vpop.permute.xlu1 %185  ;;  %v579_v32 = vpop.permute.xlu0 %578 }
 0x217   :  { %v187_v33 = vadd.f32 %v186_v31, %v184_v27  ;;  %v580_v35 = vadd.f32 %v579_v32, %v577_v28  ;;  %v611_v27 = vrot.slane %v2186_v20, %v200_v18 }
 0x219   :  { %188 = vrot.lane.b32.xlu0 %v187_v33, %s1970_s28  ;;  %581 = vrot.lane.b32.xlu1 %v580_v35, %s1970_s28 }
 0x287   :  { %v556_v37 = vpop.permute.xlu0 %555 }
 0x288   :  { %v557_v38 = vadd.f32 %v556_v37, %v554_v30 }
 0x28a   :  { %558 = vrot.lane.b32.xlu1 %v557_v38, %s1964_s19 }
 0x28b   :  { %v582_v42 = vpop.permute.xlu1 %581  ;;  %v189_v43 = vpop.permute.xlu0 %188 }
 0x28c   :  { %v583_v44 = vadd.f32 %v582_v42, %v580_v35  ;;  %v2249_v45 = vadd.f32 %v189_v43, %v187_v33  ;;  %v619_v33 = vrot.slane %v2186_v20, %v618_v19 }
 0x28e   :  { %584 = vrot.lane.b32.xlu0 %v583_v44, %s1964_s19  ;;  %191 = vrot.lane.b32.xlu1 %v2249_v45, %s1964_s19 }
 0x2fc   :  { %v559_v7 = vpop.permute.xlu1 %558 }
 0x2fd   :  { %v560_v8 = vadd.f32 %v559_v7, %v557_v38 }
 0x2ff   :  { %v561_v9 = vmul.f32 0.001953125, %v560_v8 }
 0x300   :  { %v585_v10 = vpop.permute.xlu0 %584  ;;  %v192_v21 = vpop.permute.xlu1 %191 }
 0x301   :  { %v586_v11 = vadd.f32 %v585_v10, %v583_v44  ;;  %v588_v12 = vmul.f32 %v561_v9, %v561_v9  ;;  %v595_v17 = vrot.slane %v561_v9, %v2196_v34  ;;  %v193_v32 = vadd.f32 %v192_v21, %v2249_v45 }
 0x303   :  { %v587_v13 = vmul.f32 0.001953125, %v586_v11  ;;  %v596_v25 = vsub.f32 %v2200_v51, %v595_v17  ;;  %v597_v28 = vsub.f32 %v2204_v55, %v595_v17  ;;  %v598_v29 = vsub.f32 %v2202_v54, %v595_v17 }
 0x304   :  { %v599_v30 = vsub.f32 %v2208_v57, %v595_v17  ;;  %v197_v55 = vrot.slane %v193_v32, %v2196_v34  ;;  %v201_v40 = vrot.slane %v193_v32, %v200_v18 }
 0x305   :  { %v589_v14 = vsub.f32 %v587_v13, %v588_v12 }
 0x307   :  { %v590_v16 = vadd.f32 1e-05, %v589_v14 }
 0x309   :  { %1936 = vrsqrt.f32 %v590_v16  ;;  %v709_v16 = vrot.slane %v2186_v20, %v708_v59 }
 0x316   :  { %v1937_v23 = vpop.eup %1936 }
 0x317   :  { %v603_v31 = vrot.slane %v1937_v23, %v2196_v34 }
 0x319   :  { %v607_v35 = vmul.f32 %v603_v31, %v599_v30  ;;  %v604_v24 = vmul.f32 %v603_v31, %v596_v25  ;;  %v605_v26 = vmul.f32 %v603_v31, %v597_v28  ;;  %v606_v36 = vmul.f32 %v603_v31, %v598_v29 }
 0x31b   :  { %v615_v37 = vmul.f32 %v611_v27, %v607_v35  ;;  %v612_v51 = vmul.f32 %v611_v27, %v604_v24  ;;  %v613_v38 = vmul.f32 %v611_v27, %v605_v26  ;;  %v614_v39 = vmul.f32 %v611_v27, %v606_v36 }
 0x31d   :  { %v620_v54 = vadd.f32 %v619_v33, %v612_v51  ;;  %v621_v41 = vadd.f32 %v619_v33, %v613_v38  ;;  %v623_v57 = vadd.f32 %v619_v33, %v615_v37  ;;  %v622_v42 = vadd.f32 %v619_v33, %v614_v39 }
 0x31f   :  { %v624_v43 = vadd.f32 %v620_v54, %v197_v55  ;;  %v625_v44 = vadd.f32 %v621_v41, %v197_v55  ;;  %v627_v45 = vadd.f32 %v623_v57, %v201_v40  ;;  %v626_v46 = vadd.f32 %v622_v42, %v201_v40 }
 0x321   :  { %v676_v47 = vrot.slane %v624_v43, 7  ;;  %v677_v48 = vrot.slane %v625_v44, 7  ;;  %v679_v49 = vrot.slane %v627_v45, 7  ;;  %v701_v50 = vpack.c.bf16 %v625_v44, %v624_v43 }
 0x322   :  { %v688_v52 = vrot.slane %v624_v43, 1  ;;  %v689_v53 = vrot.slane %v625_v44, 1  ;;  %v690_v56 = vrot.slane %v626_v46, 1  ;;  %v691_v61 = vrot.slane %v627_v45, 1 }
 0x323   :  { %v682_v58 = vsel %vm254_vm2, %v676_v47, %v677_v48  ;;  %v683_v60 = vsel %vm254_vm2, %v679_v49, %v676_v47  ;;  %886 = vmatprep.mubr.bf16.mxu1 %v701_v50  ;;  %v704_v2 = vpack.c.bf16 %v627_v45, %v626_v46  ;;  %v678_v7 = vrot.slane %v626_v46, 7 }
 0x324   :  { %v1562_v62 = vpack.c.bf16 %v682_v58, %v683_v60  ;;  %v693_v63 = vsel %vm271_vm1, %v689_v53, %v690_v56  ;;  %v694_v0 = vsel %vm271_vm1, %v688_v52, %v689_v53  ;;  %v692_v4 = vsel %vm271_vm1, %v690_v56, %v691_v61 }
 0x325   :  { %v1568_v3 = vpack.c.bf16 %v693_v63, %v694_v0  ;;  %v695_v5 = vsel %vm271_vm1, %v691_v61, %v688_v52  ;;  %v680_v9 = vsel %vm254_vm2, %v678_v7, %v679_v49  ;;  %v681_v10 = vsel %vm254_vm2, %v677_v48, %v678_v7 }
 0x326   :  { %1563 = vmatmul.mubr.msk.bf16.vlgmr.msra.gmra.mxu1 %vm2120_vm6, %v1562_v62  ;;  %v1571_v8 = vpack.c.bf16 %v695_v5, %v692_v4  ;;  %v1565_v11 = vpack.c.bf16 %v680_v9, %v681_v10 }
 0x327   :  { %1827 = vmatprep.mubr.msk.bf16.mxu0 %vm2135_vm8, %v1568_v3  ;;  %894 = vmatprep.mubr.bf16.mxu1 %v704_v2 }
 0x328   :  { %1828 = vmatmul.mubr.msk.bf16.vlgmr.msra.gmra.mxu0 %vm2173_vm11, %v1571_v8 }
 0x32e   :  { %1566 = vmatmul.mubr.msk.bf16.gmra.mxu1 %vm2143_vm9, %v1565_v11 }
 0x3e6   :  { %v1684_v12 = vpop.f32.mrf.mxu1 }
 0x3e8   :  { %v1829_v13 = vpop.f32.mrf.mxu0  ;;  %v1685_v1 = vpop.f32.mrf.mxu1 }
 0x3e9   :  { %v1686_v14 = vadd.f32 %v1685_v1, %v1684_v12  ;;  %v1900_v1 = vld [vmem:[%s2506_s2] sm:$0xff]  }
 0x3ea   :  { %v937_v15 = vpop.f32.mrf.mxu0  ;;  %v1687_v17 = vpop.f32.mrf.mxu1  ;;  %1835 = vmatprep.mubr.msk.bf16.mxu1 %vm1070_vm12, %v1900_v1  ;;  %v1928_v1 = vld [vmem:[%s2507_s3 + $0x1c0] sm:$0xff]  }
 0x3eb   :  { %v889_v21 = vadd.f32 %v1686_v14, %v709_v16  ;;  %v1909_v14 = vld [vmem:[%s2507_s3 + $0x278] sm:$0xff]  }
 0x3ec   :  { %v1830_v18 = vpop.f32.mrf.mxu0  ;;  %v1688_v19 = vpop.f32.mrf.mxu1  ;;  %1734 = vmatprep.subr.bf16.mxu0 %v1909_v14  ;;  %v1929_v14 = vld [vmem:[%s2507_s3 + $0x250] sm:$0xff]  }
 0x3ed   :  { %v1689_v23 = vadd.f32 %v1688_v19, %v1687_v17  ;;  %v938_v6 = vadd.f32 %v937_v15, %v889_v21  ;;  %v1913_v15 = vld [vmem:[%s2507_s3 + $0x270] sm:$0xff]   ;;  %v1919_v19 = vld [vmem:[%s2507_s3 + $0x228] sm:$0xff]   ;;  %v1921_v21 = vld [vmem:[%s2507_s3 + $0x260] sm:$0xff]  }
 0x3ee   :  { %v1690_v25 = vpop.f32.mrf.mxu1  ;;  %v940_v28 = vpop.f32.mrf.mxu0  ;;  %v1915_v17 = vld [vmem:[%s2507_s3 + $0x230] sm:$0xff]  }
 0x3ef   :  { %v892_v27 = vadd.f32 %v1689_v23, %v709_v16  ;;  %v2348_v26 = vmax.f32 %v938_v6, 0.0  ;;  %v1923_v23 = vld [vmem:[%s2507_s3 + $0x220] sm:$0xff]  }
 0x3f0   :  { %v1691_v29 = vpop.f32.mrf.mxu1 }
 0x3f1   :  { %v941_v30 = vadd.f32 %v940_v28, %v892_v27  ;;  %v1692_v31 = vadd.f32 %v1691_v29, %v1690_v25  ;;  %v978_v55 = vmul.f32 %v2348_v26, %v2348_v26 }
 0x3f2   :  { %v1693_v32 = vpop.f32.mrf.mxu1 }
 0x3f3   :  { %v2346_v33 = vmax.f32 %v941_v30, 0.0  ;;  %v897_v35 = vadd.f32 %v1692_v31, %v709_v16 }
 0x3f4   :  { %v1694_v24 = vpop.f32.mrf.mxu1 }
 0x3f5   :  { %v946_v36 = vadd.f32 %v1829_v13, %v897_v35  ;;  %v1695_v37 = vadd.f32 %v1694_v24, %v1693_v32  ;;  %v979_v51 = vmul.f32 %v2346_v33, %v2346_v33  ;;  %v956_v40 = vadd.f32 %v2346_v33, %v2348_v26 }
 0x3f7   :  { %v2352_v38 = vmax.f32 %v946_v36, 0.0  ;;  %v900_v39 = vadd.f32 %v1695_v37, %v709_v16  ;;  %v982_v57 = vadd.f32 %v979_v51, %v978_v55  ;;  %v1911_v16 = vld [vmem:[%s2507_s3 + $0x238] sm:$0xff]   ;;  %v1026_v36 = vsub.s32 4, %v2037_v22 }
 0x3f8   :  { %1735 = vmatpush3.bf16.msra.mxu0 %v1911_v16  ;;  %v1034_v37 = vsub.s32 5, %v2037_v22  ;;  %v1930_v16 = vld [vmem:[%s2507_s3 + $0x180] sm:$0xff]  }
 0x3f9   :  { %v980_v54 = vmul.f32 %v2352_v38, %v2352_v38  ;;  %v949_v41 = vadd.f32 %v1830_v18, %v900_v39  ;;  %v957_v42 = vadd.f32 %v956_v40, %v2352_v38  ;;  %1736 = vmatprep.subr.bf16.mxu0 %v1913_v15  ;;  %v1917_v18 = vld [vmem:[%s2507_s3 + $0x268] sm:$0xff]   ;;  %v1027_v55 = vrot.slane %v2186_v20, %v1026_v36  ;;  %v1931_v15 = vld [vmem:[%s2507_s3 + $0x210] sm:$0xff]  }
 0x3fb   :  { %v2361_v43 = vmax.f32 %v949_v41, 0.0  ;;  %v983_v44 = vadd.f32 %v982_v57, %v980_v54 }
 0x3fc   :  { %1737 = vmatpush3.bf16.msra.mxu0 %v1915_v17  ;;  %v1932_v17 = vld [vmem:[%s2507_s3 + $0x248] sm:$0xff]  }
 0x3fd   :  { %v958_v45 = vadd.f32 %v957_v42, %v2361_v43  ;;  %v981_v46 = vmul.f32 %v2361_v43, %v2361_v43  ;;  %1738 = vmatprep.subr.bf16.mxu0 %v1917_v18  ;;  %v1035_v42 = vrot.slane %v2186_v20, %v1034_v37  ;;  %v1933_v18 = vld [vmem:[%s2507_s3 + $0x208] sm:$0xff]  }
 0x3ff   :  { %v959_v47 = vrot.slane %v958_v45, 4  ;;  %v984_v48 = vadd.f32 %v983_v44, %v981_v46 }
 0x400   :  { %1739 = vmatpush3.bf16.msra.mxu0 %v1919_v19  ;;  %v1934_v19 = vld [vmem:[%s2507_s3 + $0x240] sm:$0xff]  }
 0x401   :  { %v960_v49 = vadd.f32 %v959_v47, %v958_v45  ;;  %v985_v50 = vrot.slane %v984_v48, 4  ;;  %1740 = vmatprep.subr.bf16.mxu0 %v1921_v21  ;;  %v1935_v21 = vld [vmem:[%s2507_s3 + $0x200] sm:$0xff]  }
 0x403   :  { %v961_v52 = vrot.slane %v960_v49, 2  ;;  %v986_v53 = vadd.f32 %v985_v50, %v984_v48 }
 0x404   :  { %1741 = vmatpush3.bf16.msra.mxu0 %v1923_v23 }
 0x405   :  { %v962_v56 = vadd.f32 %v961_v52, %v960_v49  ;;  %v987_v58 = vrot.slane %v986_v53, 2 }
 0x407   :  { %v963_v60 = vrot.slane %v962_v56, 1  ;;  %v988_v61 = vadd.f32 %v987_v58, %v986_v53 }
 0x409   :  { %v964_v62 = vadd.f32 %v963_v60, %v962_v56  ;;  %v989_v63 = vrot.slane %v988_v61, 1  ;;  %v1902_v60 = vld [vmem:[%s2506_s2 + $0x10] sm:$0xff]  }
 0x40b   :  { %965 = vrot.lane.b32.xlu0 %v964_v62, %s1968_s26  ;;  %v990_v0 = vadd.f32 %v989_v63, %v988_v61  ;;  %v1905_v61 = vld [vmem:[%s2507_s3 + $0x1b8] sm:$0xff]   ;;  %v1907_v63 = vld [vmem:[%s2507_s3 + $0x1b0] sm:$0xff]  }
 0x40d   :  { %991 = vrot.lane.b32.xlu1 %v990_v0, %s1968_s26 }
 0x47d   :  { %v966_v2 = vpop.permute.xlu0 %965 }
 0x47e   :  { %v967_v3 = vadd.f32 %v966_v2, %v964_v62  ;;  %v1906_v62 = vld [vmem:[%s2507_s3 + $0x1f0] sm:$0xff]   ;;  %v1903_v2 = vld [vmem:[%s2506_s2 + $0x18] sm:$0xff]  }
 0x47f   :  { %v992_v4 = vpop.permute.xlu1 %991 }
 0x480   :  { %v993_v5 = vadd.f32 %v992_v4, %v990_v0  ;;  %968 = vrot.lane.b32.xlu0 %v967_v3, %s1969_s27  ;;  %v1908_v0 = vld [vmem:[%s2507_s3 + $0x1e8] sm:$0xff]   ;;  %v1912_v4 = vld [vmem:[%s2507_s3 + $0x1e0] sm:$0xff]  }
 0x482   :  { %994 = vrot.lane.b32.xlu1 %v993_v5, %s1969_s27 }
 0x4f2   :  { %v969_v7 = vpop.permute.xlu0 %968 }
 0x4f3   :  { %v970_v8 = vadd.f32 %v969_v7, %v967_v3  ;;  %v1910_v3 = vld [vmem:[%s2507_s3 + $0x1a8] sm:$0xff]   ;;  %v1916_v7 = vld [vmem:[%s2507_s3 + $0x1d8] sm:$0xff]  }
 0x4f4   :  { %v995_v9 = vpop.permute.xlu1 %994 }
 0x4f5   :  { %v996_v10 = vadd.f32 %v995_v9, %v993_v5  ;;  %971 = vrot.lane.b32.xlu0 %v970_v8, %s1970_s28  ;;  %v1914_v5 = vld [vmem:[%s2507_s3 + $0x1a0] sm:$0xff]   ;;  %v1920_v9 = vld [vmem:[%s2507_s3 + $0x1d0] sm:$0xff]  }
 0x4f7   :  { %997 = vrot.lane.b32.xlu1 %v996_v10, %s1970_s28 }
 0x567   :  { %v972_v11 = vpop.permute.xlu0 %971 }
 0x568   :  { %v973_v59 = vadd.f32 %v972_v11, %v970_v8  ;;  %v1918_v8 = vld [vmem:[%s2507_s3 + $0x198] sm:$0xff]   ;;  %v1924_v11 = vld [vmem:[%s2507_s3 + $0x1c8] sm:$0xff]  }
 0x569   :  { %v998_v12 = vpop.permute.xlu1 %997 }
 0x56a   :  { %v999_v13 = vadd.f32 %v998_v12, %v996_v10  ;;  %974 = vrot.lane.b32.xlu0 %v973_v59, %s1964_s19  ;;  %v1922_v10 = vld [vmem:[%s2507_s3 + $0x190] sm:$0xff]   ;;  %v1926_v12 = vld [vmem:[%s2507_s3 + $0x188] sm:$0xff]  }
 0x56c   :  { %1000 = vrot.lane.b32.xlu1 %v999_v13, %s1964_s19 }
 0x5dc   :  { %v975_v25 = vpop.permute.xlu0 %974 }
 0x5dd   :  { %v976_v27 = vadd.f32 %v975_v25, %v973_v59  ;;  %v1925_v59 = vld [vmem:[%s2507_s3 + $0x258] sm:$0xff]  }
 0x5de   :  { %v1001_v28 = vpop.permute.xlu1 %1000  ;;  %1742 = vmatprep.subr.bf16.mxu0 %v1925_v59 }
 0x5df   :  { %v977_v29 = vmul.f32 0.001953125, %v976_v27  ;;  %v1002_v6 = vadd.f32 %v1001_v28, %v999_v13  ;;  %v1927_v13 = vld [vmem:[%s2507_s3 + $0x218] sm:$0xff]  }
 0x5e0   :  { %1743 = vmatpush3.bf16.msra.mxu0 %v1927_v13 }
 0x5e1   :  { %v1004_v30 = vmul.f32 %v977_v29, %v977_v29  ;;  %v1003_v31 = vmul.f32 0.001953125, %v1002_v6  ;;  %v1011_v24 = vrot.slane %v977_v29, %v2196_v34  ;;  %1744 = vmatprep.subr.bf16.mxu0 %v1929_v14 }
 0x5e3   :  { %v1005_v32 = vsub.f32 %v1003_v31, %v1004_v30  ;;  %v1012_v39 = vsub.f32 %v2348_v26, %v1011_v24  ;;  %v1013_v40 = vsub.f32 %v2346_v33, %v1011_v24  ;;  %v1014_v54 = vsub.f32 %v2352_v38, %v1011_v24 }
 0x5e4   :  { %v1015_v41 = vsub.f32 %v2361_v43, %v1011_v24  ;;  %v1901_v43 = vld [vmem:[%s2506_s2 + $0x8] sm:$0xff]   ;;  %1745 = vmatpush3.bf16.msra.mxu0 %v1931_v15 }
 0x5e5   :  { %v1006_v35 = vadd.f32 1e-05, %v1005_v32  ;;  %1746 = vmatprep.subr.bf16.mxu0 %v1932_v17 }
 0x5e7   :  { %1938 = vrsqrt.f32 %v1006_v35 }
 0x5e8   :  { %1747 = vmatpush3.bf16.msra.mxu0 %v1933_v18 }
 0x5e9   :  { %1748 = vmatprep.subr.bf16.mxu0 %v1934_v19 }
 0x5ec   :  { %1749 = vmatpush3.bf16.msra.mxu0 %v1935_v21 }
 0x5f4   :  { %v1939_v51 = vpop.eup %1938 }
 0x5f5   :  { %v1019_v57 = vrot.slane %v1939_v51, %v2196_v34  ;;  %v1904_v34 = vld [vmem:[%s2507_s3 + $0x1f8] sm:$0xff]  }
 0x5f7   :  { %v1022_v44 = vmul.f32 %v1019_v57, %v1014_v54  ;;  %v1023_v45 = vmul.f32 %v1019_v57, %v1015_v41  ;;  %v1020_v46 = vmul.f32 %v1019_v57, %v1012_v39  ;;  %v1021_v47 = vmul.f32 %v1019_v57, %v1013_v40 }
 0x5f8   :  { %v1218_v39 = vsub.s32 6, %v2037_v22 }
 0x5f9   :  { %v1030_v48 = vmul.f32 %v1027_v55, %v1022_v44  ;;  %v1031_v49 = vmul.f32 %v1027_v55, %v1023_v45  ;;  %v1028_v50 = vmul.f32 %v1027_v55, %v1020_v46  ;;  %v1029_v26 = vmul.f32 %v1027_v55, %v1021_v47 }
 0x5fa   :  { %v1219_v40 = vrot.slane %v2186_v20, %v1218_v39 }
 0x5fb   :  { %v1038_v52 = vadd.f32 %v1035_v42, %v1030_v48  ;;  %v1039_v53 = vadd.f32 %v1035_v42, %v1031_v49  ;;  %v1036_v56 = vadd.f32 %v1035_v42, %v1028_v50  ;;  %v1037_v33 = vadd.f32 %v1035_v42, %v1029_v26 }
 0x5fd   :  { %v1049_v58 = vpack.c.bf16 %v1039_v53, %v1038_v52  ;;  %v1048_v38 = vpack.c.bf16 %v1037_v33, %v1036_v56 }
 0x5ff   :  { %1831 = vmatprep.subr.bf16.mxu1 %v1049_v58 }
 0x600   :  { %1832 = vmatpush3.bf16.msra.mxu1 %v1049_v58 }
 0x601   :  { %1833 = vmatprep.subr.bf16.mxu1 %v1048_v38 }
 0x604   :  { %1834 = vmatpush3.bf16.msra.mxu1 %v1048_v38 }
 0x605   :  { %1712 = vmatprep.subr.bf16.mxu1 %v1904_v34 }
 0x607   :  { %1836 = vmatmul.mubr.msk.bf16.vlgmr.msra.gmra.mxu1 %vm1070_vm12, %v1901_v43 }
 0x608   :  { %1839 = vmatprep.mubr.msk.bf16.mxu1 %vm1070_vm12, %v1902_v60  ;;  %1713 = vmatpush3.bf16.msra.mxu1 %v1905_v61 }
 0x609   :  { %1714 = vmatprep.subr.bf16.mxu1 %v1906_v62 }
 0x60c   :  { %1715 = vmatpush3.bf16.msra.mxu1 %v1907_v63 }
 0x60d   :  { %1716 = vmatprep.subr.bf16.mxu1 %v1908_v0 }
 0x60f   :  { %1840 = vmatmul.mubr.msk.bf16.gmra.mxu1 %vm1070_vm12, %v1903_v2 }
 0x610   :  { %1717 = vmatpush3.bf16.msra.mxu1 %v1910_v3 }
 0x611   :  { %1718 = vmatprep.subr.bf16.mxu1 %v1912_v4 }
 0x614   :  { %1719 = vmatpush3.bf16.msra.mxu1 %v1914_v5 }
 0x615   :  { %1720 = vmatprep.subr.bf16.mxu1 %v1916_v7 }
 0x618   :  { %1721 = vmatpush3.bf16.msra.mxu1 %v1918_v8 }
 0x619   :  { %1722 = vmatprep.subr.bf16.mxu1 %v1920_v9 }
 0x61c   :  { %1723 = vmatpush3.bf16.msra.mxu1 %v1922_v10 }
 0x61d   :  { %1724 = vmatprep.subr.bf16.mxu1 %v1924_v11 }
 0x620   :  { %1725 = vmatpush3.bf16.msra.mxu1 %v1926_v12 }
 0x621   :  { %1726 = vmatprep.subr.bf16.mxu1 %v1928_v1 }
 0x624   :  { %1727 = vmatpush3.bf16.msra.mxu1 %v1930_v16 }
 0x6c7   :  { %v1837_v23 = vpop.f32.mrf.mxu1 }
 0x6c9   :  { %v1117_v25 = vpop.f32.mrf.mxu1 }
 0x6cb   :  { %v1838_v27 = vpop.f32.mrf.mxu1 }
 0x6cc   :  { %v1149_v28 = vpack.c.bf16 %v1838_v27, %v1837_v23 }
 0x6cd   :  { %v1120_v29 = vpop.f32.mrf.mxu1 }
 0x6ce   :  { %v1148_v6 = vpack.c.bf16 %v1120_v29, %v1117_v25  ;;  %1444 = vmatprep.mubr.bf16.mxu1 %v1149_v28 }
 0x6cf   :  { %v1841_v30 = vpop.f32.mrf.mxu1 }
 0x6d0   :  { %1445 = vmatmul.mubr.bf16.vlgmr.msra.gmra.mxu1 %v1148_v6 }
 0x6d1   :  { %v1133_v31 = vpop.f32.mrf.mxu1 }
 0x6d3   :  { %v1842_v32 = vpop.f32.mrf.mxu1 }
 0x6d4   :  { %v1151_v35 = vpack.c.bf16 %v1842_v32, %v1841_v30 }
 0x6d5   :  { %v1136_v24 = vpop.f32.mrf.mxu1 }
 0x6d6   :  { %v1150_v36 = vpack.c.bf16 %v1136_v24, %v1133_v31  ;;  %1485 = vmatprep.mubr.bf16.mxu0 %v1151_v35 }
 0x6d8   :  { %1486 = vmatmul.mubr.bf16.vlgmr.msra.gmra.mxu0 %v1150_v36 }
 0x790   :  { %v1728_v37 = vpop.f32.mrf.mxu1 }
 0x792   :  { %v1729_v51 = vpop.f32.mrf.mxu1 }
 0x793   :  { %v1730_v54 = vadd.f32 %v1729_v51, %v1728_v37 }
 0x794   :  { %v1731_v55 = vpop.f32.mrf.mxu1 }
 0x795   :  { %v1447_v44 = vadd.f32 %v1730_v54, %v1219_v40 }
 0x796   :  { %v1732_v41 = vpop.f32.mrf.mxu1 }
 0x797   :  { %v1733_v45 = vadd.f32 %v1732_v41, %v1731_v55 }
 0x798   :  { %v1750_v57 = vpop.f32.mrf.mxu0 }
 0x799   :  { %v1450_v50 = vadd.f32 %v1733_v45, %v1219_v40 }
 0x79a   :  { %v1751_v42 = vpop.f32.mrf.mxu0 }
 0x79b   :  { %v1752_v46 = vadd.f32 %v1751_v42, %v1750_v57 }
 0x79c   :  { %v1753_v47 = vpop.f32.mrf.mxu0 }
 0x79d   :  { %v1488_v48 = vadd.f32 %v1752_v46, %v1447_v44 }
 0x79e   :  { %v1754_v49 = vpop.f32.mrf.mxu0 }
 0x79f   :  { %1494 = vst [vmem:[%s2508_s4] sm:$0xff] %v1488_v48  ;;  %v1755_v26 = vadd.f32 %v1754_v49, %v1753_v47 }
 0x7a1   :  { %v1491_v22 = vadd.f32 %v1755_v26, %v1450_v50 }
 0x7a3   :  { %1495 = vst [vmem:[%s2508_s4 + $0x8] sm:$0xff] %v1491_v22 }
 0x7a4   :  { %1500 = vsyncpa [#allocation3], 1 }

</bundles_post_ra>
